<compile_context>
chip_gen: v7x
topology: tpu7x:2x2x1
jax: 0.10.0
libtpu: 0.0.40
codegen_flags: <defaults>
</compile_context>

<pallas_src>
import jax
import jax.numpy as jnp
import numpy as np
from jax.experimental import pallas as pl
from jax.experimental.pallas import tpu as pltpu

# ---- model config (consistent with fc = nn.Linear(288, num_classes)) ----
IN_CH = 3
NUM_CLASSES = 3
STEM_CH = 32            # synthetic backbone channels: 32 * 3 * 3 = 288 fc in-features
KH = KW = 3
STRIDE = 2
K_PAD = 32              # contraction dim 27 padded to 32 (8-aligned)


# ---------------- fused Pallas kernel ----------------
def _eye_net_fused_kernel(p_ref, w2_ref, bc_ref, wfc_ref, bfc_ref, o_ref):
    """conv(3x3,s2)+bias+ReLU -> 2x2 max-pool -> flatten -> Linear, for one batch block.

    p_ref  : (4, S*bt, K_PAD)  im2col tiles; axis 0 = 2x2 pool-window slot (di*2+dj),
             rows ordered (pooled position s, image b), cols (c, kh, kw) zero-padded.
    w2_ref : (K_PAD, STEM_CH)  conv weight (rows = c*9 + kh*3 + kw, zero-padded)
    bc_ref : (1, STEM_CH)      conv bias
    wfc_ref: (S, STEM_CH, NUM_CLASSES)  fc weight permuted to (s, channel, class)
    bfc_ref: (1, NUM_CLASSES)
    o_ref  : (bt, NUM_CLASSES)
    """
    n_pw = p_ref.shape[0]
    bt = o_ref.shape[0]
    n_pos = wfc_ref.shape[0]

    w2 = w2_ref[...]
    bc = bc_ref[...]

    # Conv as an MXU matmul per pool-window slot with fused bias+ReLU; the 2x2 max-pool is a
    # running max over the leading pool-window axis (pure leading-dim indexing, no relayout).
    pooled = jnp.maximum(jnp.dot(p_ref[0], w2, preferred_element_type=jnp.float32) + bc, 0.0)
    for pw in range(1, n_pw):
        y = jnp.maximum(jnp.dot(p_ref[pw], w2, preferred_element_type=jnp.float32) + bc, 0.0)
        pooled = jnp.maximum(pooled, y)
    # pooled: (S*bt, STEM_CH), rows (s, b).  nn.Dropout(0.5) is identity at inference.

    # FC: out[b, n] = bfc[n] + sum_s pooled[s*bt + b, :] @ wfc[s, :, n]
    out = bfc_ref[...] + jnp.dot(pooled[0:bt, :], wfc_ref[0],
                                 preferred_element_type=jnp.float32)
    for s in range(1, n_pos):
        out = out + jnp.dot(pooled[s * bt:(s + 1) * bt, :], wfc_ref[s],
                            preferred_element_type=jnp.float32)
    o_ref[...] = out


# ---------------- wrapper (layout plumbing only) ----------------
def eye_net_forward(x, params):
    # TODO(synk): the timm pretrained `features_only` backbone cannot be reproduced here;
    # a single deterministic stride-2 3x3 conv stem stands in for its last feature map.
    B, C, H, W = x.shape
    Ho, Wo = H // STRIDE, W // STRIDE          # conv output spatial (6, 6)
    Hp, Wp = Ho // 2, Wo // 2                  # pooled spatial (3, 3)
    S = Hp * Wp                                # 9 pooled positions
    K = C * KH * KW                            # 27

    # Batch tiling: a parallel grid axis over blocks of `bt` images (pipelines / shards
    # across TensorCores for real batch sizes; single step at tiny B).
    bt = 8 if (B % 8 == 0) else B
    NB = B // bt

    # ---- one-time weight-side layout permutation (activations are never permuted) ----
    w2 = jnp.transpose(params["stem_w"], (1, 2, 3, 0)).reshape(K, STEM_CH)      # rows (c,kh,kw)
    w2 = jnp.pad(w2, ((0, K_PAD - K), (0, 0)))                                   # (32, 32)
    bc = params["stem_b"].reshape(1, STEM_CH)
    # PyTorch flatten order is (channel, i, j): feature f = c*9 + s  ->  wfc[s, c, n]
    wfc = jnp.transpose(params["fc_w"].reshape(NUM_CLASSES, STEM_CH, S), (2, 1, 0))
    bfc = params["fc_b"].reshape(1, NUM_CLASSES)

    # ---- im2col gather (tiny: ~4.6 KB/image), ordered so pool + fc need no in-kernel relayout ----
    # conv output (ho, wo) = (2i+di, 2j+dj); patch pixel (kh, kw) reads padded input
    # (4i + 2di + kh, 4j + 2dj + kw).
    xp = jnp.pad(x, ((0, 0), (0, 0), (1, 1), (1, 1)))
    cols = []
    for di in range(2):
        for dj in range(2):
            for kh in range(KH):
                for kw in range(KW):
                    r0, c0 = 2 * di + kh, 2 * dj + kw
                    cols.append(xp[:, :, r0:r0 + 4 * (Hp - 1) + 1:4,
                                       c0:c0 + 4 * (Wp - 1) + 1:4])   # (B, C, Hp, Wp)
    pat = jnp.stack(cols, axis=0)                                      # (4*9, B, C, Hp, Wp)
    pat = pat.reshape(4, KH * KW, NB, bt, C, Hp, Wp)                   # (pw, kk, nb, bl, c, i, j)
    pat = jnp.transpose(pat, (2, 0, 5, 6, 3, 4, 1))                    # (nb, pw, i, j, bl, c, kk)
    pat = pat.reshape(NB, 4, S * bt, K)                                # rows (s, bl), cols (c, kk)
    patches = jnp.pad(pat, ((0, 0), (0, 0), (0, 0), (0, K_PAD - K)))   # K padded to 32

    flops = 2 * B * 4 * S * K_PAD * STEM_CH + 2 * B * S * STEM_CH * NUM_CLASSES
    bytes_accessed = 4 * (patches.size + w2.size + bc.size + wfc.size + bfc.size
                          + B * NUM_CLASSES)

    out = pl.pallas_call(
        _eye_net_fused_kernel,
        out_shape=jax.ShapeDtypeStruct((B, NUM_CLASSES), jnp.float32),
        grid=(NB,),
        in_specs=[
            pl.BlockSpec((None, 4, S * bt, K_PAD), lambda m: (m, 0, 0, 0)),
            pl.BlockSpec((K_PAD, STEM_CH), lambda m: (0, 0)),
            pl.BlockSpec((1, STEM_CH), lambda m: (0, 0)),
            pl.BlockSpec((S, STEM_CH, NUM_CLASSES), lambda m: (0, 0, 0)),
            pl.BlockSpec((1, NUM_CLASSES), lambda m: (0, 0)),
        ],
        out_specs=pl.BlockSpec((bt, NUM_CLASSES), lambda m: (m, 0)),
        compiler_params=pltpu.CompilerParams(dimension_semantics=("parallel",)),
        cost_estimate=pl.CostEstimate(flops=flops, transcendentals=0,
                                      bytes_accessed=bytes_accessed),
    )(patches, w2, bc, wfc, bfc)
    return out


def init_params(key):
    k1, k2, k3, k4 = jax.random.split(key, 4)
    return {
        "stem_w": 0.1 * jax.random.normal(k1, (STEM_CH, IN_CH, KH, KW), jnp.float32),
        "stem_b": 0.1 * jax.random.normal(k2, (STEM_CH,), jnp.float32),
        "fc_w": 0.05 * jax.random.normal(k3, (NUM_CLASSES, STEM_CH * 9), jnp.float32),  # (out, in)
        "fc_b": 0.05 * jax.random.normal(k4, (NUM_CLASSES,), jnp.float32),
    }


def _reference(x, params):
    # independent pure-JAX reference for correctness check
    feat = jax.lax.conv_general_dilated(
        x, params["stem_w"], window_strides=(STRIDE, STRIDE), padding=((1, 1), (1, 1)),
        dimension_numbers=("NCHW", "OIHW", "NCHW"))
    feat = jnp.maximum(feat + params["stem_b"][None, :, None, None], 0.0)
    pooled = jax.lax.reduce_window(feat, -jnp.inf, jax.lax.max,
                                   (1, 1, 2, 2), (1, 1, 2, 2), "VALID")
    flat = pooled.reshape(pooled.shape[0], -1)
    return flat @ params["fc_w"].T + params["fc_b"]


if __name__ == "__main__":
    key = jax.random.PRNGKey(0)
    kx, kp = jax.random.split(key)
    x = jax.random.normal(kx, (2, IN_CH, 12, 12), jnp.float32)   # NCHW, like PyTorch
    params = init_params(kp)

    fwd = jax.jit(eye_net_forward)
    out = jax.block_until_ready(fwd(x, params))

    ref = _reference(x, params)
    np.testing.assert_allclose(np.asarray(out), np.asarray(ref), atol=1e-4, rtol=1e-4)
    assert out.shape == (2, NUM_CLASSES)
    print("KERNEL_OK")
</pallas_src>

<mosaic_0001>
module attributes {stable_mosaic.version = 11 : i64} {
  func.func @_eye_net_fused_kernel(%arg0: i32, %arg1: memref<1x4x18x32xf32, #tpu.memory_space<vmem>>, %arg2: memref<32x32xf32, #tpu.memory_space<vmem>>, %arg3: memref<1x32xf32, #tpu.memory_space<vmem>>, %arg4: memref<9x32x3xf32, #tpu.memory_space<vmem>>, %arg5: memref<1x3xf32, #tpu.memory_space<vmem>>, %arg6: memref<2x3xf32, #tpu.memory_space<vmem>>) attributes {dimension_semantics = [#tpu.dimension_semantics<parallel>], iteration_bounds = array<i64: 1>, scalar_prefetch = 0 : i64, scratch_operands = 0 : i64, tpu.core_type = #tpu.core_type<tc>, window_params = [{transform_indices = @transform_0, window_bounds = array<i64: 1, 4, 18, 32>}, {pipeline_mode = #tpu.pipeline_mode<synchronous>, transform_indices = @transform_1, window_bounds = array<i64: 32, 32>}, {pipeline_mode = #tpu.pipeline_mode<synchronous>, transform_indices = @transform_2, window_bounds = array<i64: 1, 32>}, {pipeline_mode = #tpu.pipeline_mode<synchronous>, transform_indices = @transform_3, window_bounds = array<i64: 9, 32, 3>}, {pipeline_mode = #tpu.pipeline_mode<synchronous>, transform_indices = @transform_4, window_bounds = array<i64: 1, 3>}, {transform_indices = @transform_5, window_bounds = array<i64: 2, 3>}]} {
    %c0 = arith.constant 0 : index
    %c0_0 = arith.constant 0 : index
    %0 = vector.load %arg2[%c0, %c0_0] : memref<32x32xf32, #tpu.memory_space<vmem>>, vector<32x32xf32>
    %c0_1 = arith.constant 0 : index
    %c0_2 = arith.constant 0 : index
    %1 = vector.load %arg3[%c0_1, %c0_2] : memref<1x32xf32, #tpu.memory_space<vmem>>, vector<1x32xf32>
    %c0_3 = arith.constant 0 : index
    %c0_4 = arith.constant 0 : index
    %c0_5 = arith.constant 0 : index
    %c0_6 = arith.constant 0 : index
    %2 = vector.load %arg1[%c0_3, %c0_4, %c0_5, %c0_6] : memref<1x4x18x32xf32, #tpu.memory_space<vmem>>, vector<1x1x18x32xf32>
    %3 = vector.shape_cast %2 : vector<1x1x18x32xf32> to vector<18x32xf32>
    %cst = arith.constant dense<0.000000e+00> : vector<18x32xf32>
    %4 = tpu.matmul %3, %0, %cst {dimension_numbers = #tpu.dot_dimension_numbers<[1], [0], [0], [1], [0, 0, 1, 1], [], []>} : vector<18x32xf32>, vector<32x32xf32>, vector<18x32xf32> -> vector<18x32xf32>
    %5 = vector.broadcast %1 : vector<1x32xf32> to vector<18x32xf32>
    %6 = arith.addf %4, %5 : vector<18x32xf32>
    %cst_7 = arith.constant 0.000000e+00 : f32
    %7 = vector.broadcast %cst_7 : f32 to vector<18x32xf32>
    %8 = arith.maximumf %6, %7 : vector<18x32xf32>
    %c0_8 = arith.constant 0 : index
    %c1 = arith.constant 1 : index
    %c0_9 = arith.constant 0 : index
    %c0_10 = arith.constant 0 : index
    %9 = vector.load %arg1[%c0_8, %c1, %c0_9, %c0_10] : memref<1x4x18x32xf32, #tpu.memory_space<vmem>>, vector<1x1x18x32xf32>
    %10 = vector.shape_cast %9 : vector<1x1x18x32xf32> to vector<18x32xf32>
    %cst_11 = arith.constant dense<0.000000e+00> : vector<18x32xf32>
    %11 = tpu.matmul %10, %0, %cst_11 {dimension_numbers = #tpu.dot_dimension_numbers<[1], [0], [0], [1], [0, 0, 1, 1], [], []>} : vector<18x32xf32>, vector<32x32xf32>, vector<18x32xf32> -> vector<18x32xf32>
    %12 = vector.broadcast %1 : vector<1x32xf32> to vector<18x32xf32>
    %13 = arith.addf %11, %12 : vector<18x32xf32>
    %cst_12 = arith.constant 0.000000e+00 : f32
    %14 = vector.broadcast %cst_12 : f32 to vector<18x32xf32>
    %15 = arith.maximumf %13, %14 : vector<18x32xf32>
    %16 = arith.maximumf %8, %15 : vector<18x32xf32>
    %c0_13 = arith.constant 0 : index
    %c2 = arith.constant 2 : index
    %c0_14 = arith.constant 0 : index
    %c0_15 = arith.constant 0 : index
    %17 = vector.load %arg1[%c0_13, %c2, %c0_14, %c0_15] : memref<1x4x18x32xf32, #tpu.memory_space<vmem>>, vector<1x1x18x32xf32>
    %18 = vector.shape_cast %17 : vector<1x1x18x32xf32> to vector<18x32xf32>
    %cst_16 = arith.constant dense<0.000000e+00> : vector<18x32xf32>
    %19 = tpu.matmul %18, %0, %cst_16 {dimension_numbers = #tpu.dot_dimension_numbers<[1], [0], [0], [1], [0, 0, 1, 1], [], []>} : vector<18x32xf32>, vector<32x32xf32>, vector<18x32xf32> -> vector<18x32xf32>
    %20 = vector.broadcast %1 : vector<1x32xf32> to vector<18x32xf32>
    %21 = arith.addf %19, %20 : vector<18x32xf32>
    %cst_17 = arith.constant 0.000000e+00 : f32
    %22 = vector.broadcast %cst_17 : f32 to vector<18x32xf32>
    %23 = arith.maximumf %21, %22 : vector<18x32xf32>
    %24 = arith.maximumf %16, %23 : vector<18x32xf32>
    %c0_18 = arith.constant 0 : index
    %c3 = arith.constant 3 : index
    %c0_19 = arith.constant 0 : index
    %c0_20 = arith.constant 0 : index
    %25 = vector.load %arg1[%c0_18, %c3, %c0_19, %c0_20] : memref<1x4x18x32xf32, #tpu.memory_space<vmem>>, vector<1x1x18x32xf32>
    %26 = vector.shape_cast %25 : vector<1x1x18x32xf32> to vector<18x32xf32>
    %cst_21 = arith.constant dense<0.000000e+00> : vector<18x32xf32>
    %27 = tpu.matmul %26, %0, %cst_21 {dimension_numbers = #tpu.dot_dimension_numbers<[1], [0], [0], [1], [0, 0, 1, 1], [], []>} : vector<18x32xf32>, vector<32x32xf32>, vector<18x32xf32> -> vector<18x32xf32>
    %28 = vector.broadcast %1 : vector<1x32xf32> to vector<18x32xf32>
    %29 = arith.addf %27, %28 : vector<18x32xf32>
    %cst_22 = arith.constant 0.000000e+00 : f32
    %30 = vector.broadcast %cst_22 : f32 to vector<18x32xf32>
    %31 = arith.maximumf %29, %30 : vector<18x32xf32>
    %32 = arith.maximumf %24, %31 : vector<18x32xf32>
    %c0_23 = arith.constant 0 : index
    %c0_24 = arith.constant 0 : index
    %33 = vector.load %arg5[%c0_23, %c0_24] : memref<1x3xf32, #tpu.memory_space<vmem>>, vector<1x3xf32>
    %34 = vector.extract_strided_slice %32 {offsets = [0, 0], sizes = [2, 32], strides = [1, 1]} : vector<18x32xf32> to vector<2x32xf32>
    %c0_25 = arith.constant 0 : index
    %c0_26 = arith.constant 0 : index
    %c0_27 = arith.constant 0 : index
    %35 = vector.load %arg4[%c0_25, %c0_26, %c0_27] : memref<9x32x3xf32, #tpu.memory_space<vmem>>, vector<1x32x3xf32>
    %36 = vector.shape_cast %35 : vector<1x32x3xf32> to vector<32x3xf32>
    %cst_28 = arith.constant dense<0.000000e+00> : vector<2x3xf32>
    %37 = tpu.matmul %34, %36, %cst_28 {dimension_numbers = #tpu.dot_dimension_numbers<[1], [0], [0], [1], [0, 0, 1, 1], [], []>} : vector<2x32xf32>, vector<32x3xf32>, vector<2x3xf32> -> vector<2x3xf32>
    %38 = vector.broadcast %33 : vector<1x3xf32> to vector<2x3xf32>
    %39 = arith.addf %38, %37 : vector<2x3xf32>
    %40 = vector.extract_strided_slice %32 {offsets = [2, 0], sizes = [2, 32], strides = [1, 1]} : vector<18x32xf32> to vector<2x32xf32>
    %c1_29 = arith.constant 1 : index
    %c0_30 = arith.constant 0 : index
    %c0_31 = arith.constant 0 : index
    %41 = vector.load %arg4[%c1_29, %c0_30, %c0_31] : memref<9x32x3xf32, #tpu.memory_space<vmem>>, vector<1x32x3xf32>
    %42 = vector.shape_cast %41 : vector<1x32x3xf32> to vector<32x3xf32>
    %cst_32 = arith.constant dense<0.000000e+00> : vector<2x3xf32>
    %43 = tpu.matmul %40, %42, %cst_32 {dimension_numbers = #tpu.dot_dimension_numbers<[1], [0], [0], [1], [0, 0, 1, 1], [], []>} : vector<2x32xf32>, vector<32x3xf32>, vector<2x3xf32> -> vector<2x3xf32>
    %44 = arith.addf %39, %43 : vector<2x3xf32>
    %45 = vector.extract_strided_slice %32 {offsets = [4, 0], sizes = [2, 32], strides = [1, 1]} : vector<18x32xf32> to vector<2x32xf32>
    %c2_33 = arith.constant 2 : index
    %c0_34 = arith.constant 0 : index
    %c0_35 = arith.constant 0 : index
    %46 = vector.load %arg4[%c2_33, %c0_34, %c0_35] : memref<9x32x3xf32, #tpu.memory_space<vmem>>, vector<1x32x3xf32>
    %47 = vector.shape_cast %46 : vector<1x32x3xf32> to vector<32x3xf32>
    %cst_36 = arith.constant dense<0.000000e+00> : vector<2x3xf32>
    %48 = tpu.matmul %45, %47, %cst_36 {dimension_numbers = #tpu.dot_dimension_numbers<[1], [0], [0], [1], [0, 0, 1, 1], [], []>} : vector<2x32xf32>, vector<32x3xf32>, vector<2x3xf32> -> vector<2x3xf32>
    %49 = arith.addf %44, %48 : vector<2x3xf32>
    %50 = vector.extract_strided_slice %32 {offsets = [6, 0], sizes = [2, 32], strides = [1, 1]} : vector<18x32xf32> to vector<2x32xf32>
    %c3_37 = arith.constant 3 : index
    %c0_38 = arith.constant 0 : index
    %c0_39 = arith.constant 0 : index
    %51 = vector.load %arg4[%c3_37, %c0_38, %c0_39] : memref<9x32x3xf32, #tpu.memory_space<vmem>>, vector<1x32x3xf32>
    %52 = vector.shape_cast %51 : vector<1x32x3xf32> to vector<32x3xf32>
    %cst_40 = arith.constant dense<0.000000e+00> : vector<2x3xf32>
    %53 = tpu.matmul %50, %52, %cst_40 {dimension_numbers = #tpu.dot_dimension_numbers<[1], [0], [0], [1], [0, 0, 1, 1], [], []>} : vector<2x32xf32>, vector<32x3xf32>, vector<2x3xf32> -> vector<2x3xf32>
    %54 = arith.addf %49, %53 : vector<2x3xf32>
    %55 = vector.extract_strided_slice %32 {offsets = [8, 0], sizes = [2, 32], strides = [1, 1]} : vector<18x32xf32> to vector<2x32xf32>
    %c4 = arith.constant 4 : index
    %c0_41 = arith.constant 0 : index
    %c0_42 = arith.constant 0 : index
    %56 = vector.load %arg4[%c4, %c0_41, %c0_42] : memref<9x32x3xf32, #tpu.memory_space<vmem>>, vector<1x32x3xf32>
    %57 = vector.shape_cast %56 : vector<1x32x3xf32> to vector<32x3xf32>
    %cst_43 = arith.constant dense<0.000000e+00> : vector<2x3xf32>
    %58 = tpu.matmul %55, %57, %cst_43 {dimension_numbers = #tpu.dot_dimension_numbers<[1], [0], [0], [1], [0, 0, 1, 1], [], []>} : vector<2x32xf32>, vector<32x3xf32>, vector<2x3xf32> -> vector<2x3xf32>
    %59 = arith.addf %54, %58 : vector<2x3xf32>
    %60 = vector.extract_strided_slice %32 {offsets = [10, 0], sizes = [2, 32], strides = [1, 1]} : vector<18x32xf32> to vector<2x32xf32>
    %c5 = arith.constant 5 : index
    %c0_44 = arith.constant 0 : index
    %c0_45 = arith.constant 0 : index
    %61 = vector.load %arg4[%c5, %c0_44, %c0_45] : memref<9x32x3xf32, #tpu.memory_space<vmem>>, vector<1x32x3xf32>
    %62 = vector.shape_cast %61 : vector<1x32x3xf32> to vector<32x3xf32>
    %cst_46 = arith.constant dense<0.000000e+00> : vector<2x3xf32>
    %63 = tpu.matmul %60, %62, %cst_46 {dimension_numbers = #tpu.dot_dimension_numbers<[1], [0], [0], [1], [0, 0, 1, 1], [], []>} : vector<2x32xf32>, vector<32x3xf32>, vector<2x3xf32> -> vector<2x3xf32>
    %64 = arith.addf %59, %63 : vector<2x3xf32>
    %65 = vector.extract_strided_slice %32 {offsets = [12, 0], sizes = [2, 32], strides = [1, 1]} : vector<18x32xf32> to vector<2x32xf32>
    %c6 = arith.constant 6 : index
    %c0_47 = arith.constant 0 : index
    %c0_48 = arith.constant 0 : index
    %66 = vector.load %arg4[%c6, %c0_47, %c0_48] : memref<9x32x3xf32, #tpu.memory_space<vmem>>, vector<1x32x3xf32>
    %67 = vector.shape_cast %66 : vector<1x32x3xf32> to vector<32x3xf32>
    %cst_49 = arith.constant dense<0.000000e+00> : vector<2x3xf32>
    %68 = tpu.matmul %65, %67, %cst_49 {dimension_numbers = #tpu.dot_dimension_numbers<[1], [0], [0], [1], [0, 0, 1, 1], [], []>} : vector<2x32xf32>, vector<32x3xf32>, vector<2x3xf32> -> vector<2x3xf32>
    %69 = arith.addf %64, %68 : vector<2x3xf32>
    %70 = vector.extract_strided_slice %32 {offsets = [14, 0], sizes = [2, 32], strides = [1, 1]} : vector<18x32xf32> to vector<2x32xf32>
    %c7 = arith.constant 7 : index
    %c0_50 = arith.constant 0 : index
    %c0_51 = arith.constant 0 : index
    %71 = vector.load %arg4[%c7, %c0_50, %c0_51] : memref<9x32x3xf32, #tpu.memory_space<vmem>>, vector<1x32x3xf32>
    %72 = vector.shape_cast %71 : vector<1x32x3xf32> to vector<32x3xf32>
    %cst_52 = arith.constant dense<0.000000e+00> : vector<2x3xf32>
    %73 = tpu.matmul %70, %72, %cst_52 {dimension_numbers = #tpu.dot_dimension_numbers<[1], [0], [0], [1], [0, 0, 1, 1], [], []>} : vector<2x32xf32>, vector<32x3xf32>, vector<2x3xf32> -> vector<2x3xf32>
    %74 = arith.addf %69, %73 : vector<2x3xf32>
    %75 = vector.extract_strided_slice %32 {offsets = [16, 0], sizes = [2, 32], strides = [1, 1]} : vector<18x32xf32> to vector<2x32xf32>
    %c8 = arith.constant 8 : index
    %c0_53 = arith.constant 0 : index
    %c0_54 = arith.constant 0 : index
    %76 = vector.load %arg4[%c8, %c0_53, %c0_54] : memref<9x32x3xf32, #tpu.memory_space<vmem>>, vector<1x32x3xf32>
    %77 = vector.shape_cast %76 : vector<1x32x3xf32> to vector<32x3xf32>
    %cst_55 = arith.constant dense<0.000000e+00> : vector<2x3xf32>
    %78 = tpu.matmul %75, %77, %cst_55 {dimension_numbers = #tpu.dot_dimension_numbers<[1], [0], [0], [1], [0, 0, 1, 1], [], []>} : vector<2x32xf32>, vector<32x3xf32>, vector<2x3xf32> -> vector<2x3xf32>
    %79 = arith.addf %74, %78 : vector<2x3xf32>
    %c0_56 = arith.constant 0 : index
    %c0_57 = arith.constant 0 : index
    %80 = vector.load %arg6[%c0_56, %c0_57] : memref<2x3xf32, #tpu.memory_space<vmem>>, vector<2x3xf32>
    tpu.vector_store %arg6[%c0_56, %c0_57], %79 {strides = array<i32>} : memref<2x3xf32, #tpu.memory_space<vmem>>, vector<2x3xf32>,
    return
  }
  func.func @transform_0(%arg0: i32) -> (i32, i32, i32, i32) {
    %c0_i32 = arith.constant 0 : i32
    %c0_i32_0 = arith.constant 0 : i32
    %c0_i32_1 = arith.constant 0 : i32
    %c0_i32_2 = arith.constant 0 : i32
    return %arg0, %c0_i32, %c0_i32_0, %c0_i32_1 : i32, i32, i32, i32
  }
  func.func @transform_1(%arg0: i32) -> (i32, i32) {
    %c0_i32 = arith.constant 0 : i32
    %c0_i32_0 = arith.constant 0 : i32
    %c0_i32_1 = arith.constant 0 : i32
    return %c0_i32, %c0_i32_0 : i32, i32
  }
  func.func @transform_2(%arg0: i32) -> (i32, i32) {
    %c0_i32 = arith.constant 0 : i32
    %c0_i32_0 = arith.constant 0 : i32
    %c0_i32_1 = arith.constant 0 : i32
    return %c0_i32, %c0_i32_0 : i32, i32
  }
  func.func @transform_3(%arg0: i32) -> (i32, i32, i32) {
    %c0_i32 = arith.constant 0 : i32
    %c0_i32_0 = arith.constant 0 : i32
    %c0_i32_1 = arith.constant 0 : i32
    %c0_i32_2 = arith.constant 0 : i32
    return %c0_i32, %c0_i32_0, %c0_i32_1 : i32, i32, i32
  }
  func.func @transform_4(%arg0: i32) -> (i32, i32) {
    %c0_i32 = arith.constant 0 : i32
    %c0_i32_0 = arith.constant 0 : i32
    %c0_i32_1 = arith.constant 0 : i32
    return %c0_i32, %c0_i32_0 : i32, i32
  }
  func.func @transform_5(%arg0: i32) -> (i32, i32) {
    %c0_i32 = arith.constant 0 : i32
    %c0_i32_0 = arith.constant 0 : i32
    return %arg0, %c0_i32 : i32, i32
  }
}

</mosaic_0001>

<bundles_post_ra>
// kernel: eye_net_forward.1
= control target key start
LH: loop header
LB: loop body
LE: loop exit
PB: predicated region body
PF: predicated region fallthrough
CT: control target
= control target key end

     0   :  { %v1584_v3 = vmov 0.0|0.0   ;;  %vm1585_vm0 = vmmov 0   ;;  %v1586_v6 = vmov 0.0   ;;  %s1890_s0 = inlined_call_operand.vmem [shape: f32[1,4,18,32], index: 0, kind: input, shape index: {}]   ;;  %s1891_s1 = inlined_call_operand.vmem [shape: f32[32,32], index: 1, kind: input, shape index: {}]   ;;  %s1892_s2 = inlined_call_operand.vmem [shape: f32[1,32], index: 2, kind: input, shape index: {}]   ;;  %s1893_s3 = inlined_call_operand.vmem [shape: f32[9,32,3], index: 3, kind: input, shape index: {}]   ;;  %s1894_s4 = inlined_call_operand.vmem [shape: f32[1,3], index: 4, kind: input, shape index: {}]   ;;  %s1895_s5 = inlined_call_operand.hbm [shape: f32[2,3], index: 5, kind: output, shape index: {}]  }
   0x1   :  { %v21_v0 = vld [vmem:[%s1891_s1] sm:$0xff]  ;;  %v22_v1 = vld [vmem:[%s1891_s1 + $0x8] sm:$0xff]  ;;  %v23_v2 = vld [vmem:[%s1891_s1 + $0x10] sm:$0xff]  ;;  %1462 = vmatprep.subr.bf16.mxu1 %v1584_v3  ;;  %1303 = vmatprep.mubr.msk.f32.mxu1 %vm1585_vm0, %v1586_v6 }
   0x2   :  { %v1463_v4 = vpack.c.bf16 %v22_v1, %v21_v0  ;;  %v24_v5 = vld [vmem:[%s1891_s1 + $0x18] sm:$0xff]  ;;  %1492 = vmatprep.subr.bf16.mxu0 %v1584_v3  ;;  %1382 = vmatprep.mubr.msk.f32.mxu0 %vm1585_vm0, %v1586_v6 }
   0x3   :  { %v1466_v7 = vpack.c.bf16 %v24_v5, %v23_v2 }
   0x4   :  { %1464 = vmatpush3.bf16.msra.mxu1 %v1463_v4 }
   0x5   :  { %1465 = vmatprep.subr.bf16.mxu1 %v1584_v3 }
   0x6   :  { %10 = vsyncpa [#allocation3], 0  ;;  %v26_v8 = vld [vmem:[%s1890_s0] sm:$0xff]  ;;  %vm35_vm1 = vcmask 261120   ;;  %v27_v9 = vld [vmem:[%s1890_s0 + $0x8] sm:$0xff]  ;;  %vm1142_vm2 = vcmask 17408  }
   0x7   :  { %v28_v10 = vld [vmem:[%s1890_s0 + $0x10] sm:$0x3]  ;;  %v1162_v11 = vld [vmem:[%s1890_s0 + $0x18] sm:$0xff]  ;;  %v1163_v12 = vld [vmem:[%s1890_s0 + $0x20] sm:$0xff] }
   0x8   :  { %1467 = vmatpush3.bf16.msra.mxu1 %v1466_v7  ;;  %v1164_v13 = vld [vmem:[%s1890_s0 + $0x28] sm:$0x3]  ;;  %v1168_v14 = vld [vmem:[%s1890_s0 + $0x30] sm:$0xff]  ;;  %v1169_v15 = vld [vmem:[%s1890_s0 + $0x38] sm:$0xff] }
   0x9   :  { %1468 = vmatprep.subr.bf16.mxu1 %v1584_v3  ;;  %v1170_v16 = vld [vmem:[%s1890_s0 + $0x40] sm:$0x3]  ;;  %v1174_v17 = vld [vmem:[%s1890_s0 + $0x48] sm:$0xff]  ;;  %v1175_v18 = vld [vmem:[%s1890_s0 + $0x50] sm:$0xff] }
   0xa   :  { %v1176_v19 = vld [vmem:[%s1890_s0 + $0x58] sm:$0x3]  ;;  %v426_v20 = vld [vmem:[%s1893_s3] sm:$0xff]  ;;  %v427_v21 = vld [vmem:[%s1893_s3 + $0x8] sm:$0xff] }
   0xb   :  { %1304 = vmatmul.mubr.msk.f32.vlgmr.msra.gmra.mrb[0].mxu1 %vm35_vm1, %v26_v8  ;;  %v1487_v22 = vpack.c.bf16 %v427_v21, %v426_v20  ;;  %v1182_v23 = vld [vmem:[%s1893_s3 + $0x20] sm:$0xff]  ;;  %v1183_v24 = vld [vmem:[%s1893_s3 + $0x28] sm:$0xff]  ;;  %v428_v26 = vld [vmem:[%s1893_s3 + $0x10] sm:$0xff] }
   0xc   :  { %1470 = vmatpush3.bf16.msra.mxu1 %v1463_v4  ;;  %1306 = vmatprep.mubr.msk.f32.mxu1 %vm1585_vm0, %v1586_v6  ;;  %v1493_v25 = vpack.c.bf16 %v1183_v24, %v1182_v23  ;;  %v429_v27 = vld [vmem:[%s1893_s3 + $0x18] sm:$0xff]  ;;  %v1184_v29 = vld [vmem:[%s1893_s3 + $0x30] sm:$0xff]  ;;  %v1158_v36 = vld [vmem:[%s1892_s2] ss:$0 sm:$0xff] }
   0xd   :  { %1471 = vmatprep.subr.bf16.mxu1 %v1584_v3  ;;  %v1490_v28 = vpack.c.bf16 %v429_v27, %v428_v26  ;;  %v1185_v30 = vld [vmem:[%s1893_s3 + $0x38] sm:$0xff]  ;;  %v1189_v26 = vld [vmem:[%s1893_s3 + $0x50] sm:$0xff] }
   0xe   :  { %1494 = vmatpush3.bf16.msra.mxu0 %v1493_v25  ;;  %v1496_v31 = vpack.c.bf16 %v1185_v30, %v1184_v29  ;;  %v1190_v27 = vld [vmem:[%s1893_s3 + $0x58] sm:$0xff] }
   0xf   :  { %1307 = vmatmul.mubr.msk.f32.gmra.mrb[2].mxu1 %vm35_vm1, %v27_v9  ;;  %1495 = vmatprep.subr.bf16.mxu0 %v1584_v3 }
  0x10   :  { %1309 = vmatprep.mubr.msk.f32.mxu1 %vm1585_vm0, %v1586_v6  ;;  %1473 = vmatpush3.bf16.msra.mxu1 %v1466_v7 }
  0x11   :  { %1474 = vmatprep.subr.bf16.mxu1 %v1584_v3 }
  0x12   :  { %1497 = vmatpush3.bf16.msra.mxu0 %v1496_v31 }
  0x13   :  { %1310 = vmatmul.mubr.msk.f32.gmra.mrb[4].mxu1 %vm35_vm1, %v28_v10  ;;  %1498 = vmatprep.subr.bf16.mxu0 %v1584_v3 }
  0x14   :  { %1320 = vmatprep.mubr.msk.f32.mxu1 %vm1585_vm0, %v1586_v6 }
  0x17   :  { %1321 = vmatmul.mubr.msk.f32.vlgmr.msra.gmra.mrb[6].mxu1 %vm35_vm1, %v1162_v11 }
  0x18   :  { %1476 = vmatpush3.bf16.msra.mxu1 %v1463_v4  ;;  %1323 = vmatprep.mubr.msk.f32.mxu1 %vm1585_vm0, %v1586_v6 }
  0x19   :  { %1477 = vmatprep.subr.bf16.mxu1 %v1584_v3 }
  0x1b   :  { %1324 = vmatmul.mubr.msk.f32.gmra.mrb[8].mxu1 %vm35_vm1, %v1163_v12 }
  0x1c   :  { %1326 = vmatprep.mubr.msk.f32.mxu1 %vm1585_vm0, %v1586_v6  ;;  %1479 = vmatpush3.bf16.msra.mxu1 %v1466_v7 }
  0x1d   :  { %1480 = vmatprep.subr.bf16.mxu1 %v1584_v3 }
  0x1f   :  { %1327 = vmatmul.mubr.msk.f32.gmra.mrb[10].mxu1 %vm35_vm1, %v1164_v13 }
  0x20   :  { %1337 = vmatprep.mubr.msk.f32.mxu1 %vm1585_vm0, %v1586_v6 }
  0x23   :  { %1338 = vmatmul.mubr.msk.f32.vlgmr.msra.gmra.mrb[12].mxu1 %vm35_vm1, %v1168_v14 }
  0x24   :  { %1482 = vmatpush3.bf16.msra.mxu1 %v1463_v4  ;;  %1340 = vmatprep.mubr.msk.f32.mxu1 %vm1585_vm0, %v1586_v6 }
  0x25   :  { %1483 = vmatprep.subr.bf16.mxu1 %v1584_v3 }
  0x27   :  { %1341 = vmatmul.mubr.msk.f32.gmra.mrb[14].mxu1 %vm35_vm1, %v1169_v15 }
  0x28   :  { %1343 = vmatprep.mubr.msk.f32.mxu1 %vm1585_vm0, %v1586_v6  ;;  %1485 = vmatpush3.bf16.msra.mxu1 %v1466_v7 }
  0x29   :  { %1486 = vmatprep.subr.bf16.mxu1 %v1584_v3 }
  0x2b   :  { %1344 = vmatmul.mubr.msk.f32.gmra.mrb[16].mxu1 %vm35_vm1, %v1170_v16 }
  0x2c   :  { %1354 = vmatprep.mubr.msk.f32.mxu1 %vm1585_vm0, %v1586_v6 }
  0x2f   :  { %1355 = vmatmul.mubr.msk.f32.vlgmr.msra.gmra.mrb[18].mxu1 %vm35_vm1, %v1174_v17  ;;  %v1187_v17 = vld [vmem:[%s1893_s3 + $0x40] sm:$0xff] }
  0x30   :  { %1357 = vmatprep.mubr.msk.f32.mxu1 %vm1585_vm0, %v1586_v6  ;;  %1488 = vmatpush3.bf16.msra.mxu1 %v1487_v22 }
  0x31   :  { %1489 = vmatprep.subr.bf16.mxu1 %v1584_v3 }
  0x33   :  { %1358 = vmatmul.mubr.msk.f32.gmra.mrb[20].mxu1 %vm35_vm1, %v1175_v18  ;;  %v1188_v18 = vld [vmem:[%s1893_s3 + $0x48] sm:$0xff] }
  0x34   :  { %1360 = vmatprep.mubr.msk.f32.mxu1 %vm1585_vm0, %v1586_v6  ;;  %1491 = vmatpush3.bf16.msra.mxu1 %v1490_v28  ;;  %v1499_v23 = vpack.c.bf16 %v1188_v18, %v1187_v17 }
  0x37   :  { %1361 = vmatmul.mubr.msk.f32.gmra.mrb[22].mxu1 %vm35_vm1, %v1176_v19 }
  0x38   :  { %1371 = vmatprep.mubr.msk.f32.mxu1 %vm1585_vm0, %v1586_v6 }
  0xde   :  { %v111_v32 = vpop.f32.mrb[0].mxu1 }
  0xdf   :  { %v1305_v33 = vpop.f32.mrb[1].mxu1  ;;  %v112_v39 = vadd.f32 %v1158_v36, %v111_v32  ;;  %v1502_v32 = vpack.c.bf16 %v1190_v27, %v1189_v26 }
  0xe1   :  { %v125_v43 = vmax.f32 %v112_v39, 0.0  ;;  %v1194_v39 = vld [vmem:[%s1893_s3 + $0x70] sm:$0xff] }
  0xe2   :  { %v116_v34 = vpop.f32.mrb[2].mxu1 }
  0xe3   :  { %v1308_v35 = vpop.f32.mrb[3].mxu1  ;;  %v117_v44 = vadd.f32 %v1158_v36, %v116_v34  ;;  %v1192_v34 = vld [vmem:[%s1893_s3 + $0x60] sm:$0xff] }
  0xe4   :  { %v1193_v35 = vld [vmem:[%s1893_s3 + $0x68] sm:$0xff] }
  0xe5   :  { %v126_v50 = vmax.f32 %v117_v44, 0.0 }
  0xe6   :  { %v121_v37 = vpop.f32.mrb[4].mxu1 }
  0xe7   :  { %v1311_v38 = vpop.f32.mrb[5].mxu1  ;;  %v122_v51 = vadd.f32 %v1158_v36, %v121_v37  ;;  %v1505_v37 = vpack.c.bf16 %v1193_v35, %v1192_v34 }
  0xe9   :  { %v127_v57 = vmax.f32 %v122_v51, 0.0 }
  0xea   :  { %v207_v40 = vpop.f32.mrb[6].mxu1 }
  0xeb   :  { %v208_v41 = vadd.f32 %v1158_v36, %v207_v40  ;;  %v1322_v42 = vpop.f32.mrb[7].mxu1  ;;  %v1195_v40 = vld [vmem:[%s1893_s3 + $0x78] sm:$0xff] }
  0xec   :  { %v1197_v42 = vld [vmem:[%s1893_s3 + $0x80] sm:$0xff] }
  0xed   :  { %v221_v45 = vmax.f32 %v208_v41, 0.0  ;;  %v1508_v41 = vpack.c.bf16 %v1195_v40, %v1194_v39 }
  0xee   :  { %v212_v46 = vpop.f32.mrb[8].mxu1 }
  0xef   :  { %v224_v47 = vmax.f32 %v125_v43, %v221_v45  ;;  %v213_v48 = vadd.f32 %v1158_v36, %v212_v46  ;;  %v1325_v49 = vpop.f32.mrb[9].mxu1  ;;  %v1198_v43 = vld [vmem:[%s1893_s3 + $0x88] sm:$0xff]  ;;  %v1199_v46 = vld [vmem:[%s1893_s3 + $0x90] sm:$0xff] }
  0xf0   :  { %v1511_v44 = vpack.c.bf16 %v1198_v43, %v1197_v42  ;;  %v1202_v49 = vld [vmem:[%s1893_s3 + $0xa0] sm:$0xff] }
  0xf1   :  { %v222_v52 = vmax.f32 %v213_v48, 0.0 }
  0xf2   :  { %v217_v53 = vpop.f32.mrb[10].mxu1 }
  0xf3   :  { %v225_v54 = vmax.f32 %v126_v50, %v222_v52  ;;  %v218_v55 = vadd.f32 %v1158_v36, %v217_v53  ;;  %v1328_v56 = vpop.f32.mrb[11].mxu1  ;;  %v1203_v50 = vld [vmem:[%s1893_s3 + $0xa8] sm:$0xff]  ;;  %v1204_v52 = vld [vmem:[%s1893_s3 + $0xb0] sm:$0xff]  ;;  %v1205_v53 = vld [vmem:[%s1893_s3 + $0xb8] sm:$0xff] }
  0xf4   :  { %v1517_v51 = vpack.c.bf16 %v1203_v50, %v1202_v49  ;;  %v1208_v56 = vld [vmem:[%s1893_s3 + $0xc8] sm:$0xff] }
  0xf5   :  { %v223_v58 = vmax.f32 %v218_v55, 0.0  ;;  %v1207_v55 = vld [vmem:[%s1893_s3 + $0xc0] sm:$0xff] }
  0xf6   :  { %v306_v59 = vpop.f32.mrb[12].mxu1 }
  0xf7   :  { %v226_v60 = vmax.f32 %v127_v57, %v223_v58  ;;  %v307_v61 = vadd.f32 %v1158_v36, %v306_v59  ;;  %v1339_v62 = vpop.f32.mrb[13].mxu1  ;;  %v1523_v57 = vpack.c.bf16 %v1208_v56, %v1207_v55  ;;  %v1209_v59 = vld [vmem:[%s1893_s3 + $0xd0] sm:$0xff] }
  0xf8   :  { %v1212_v62 = vld [vmem:[%s1893_s3 + $0xe0] sm:$0xff] }
  0xf9   :  { %v320_v63 = vmax.f32 %v307_v61, 0.0 }
  0xfa   :  { %v311_v0 = vpop.f32.mrb[14].mxu1 }
  0xfb   :  { %v323_v1 = vmax.f32 %v224_v47, %v320_v63  ;;  %v312_v2 = vadd.f32 %v1158_v36, %v311_v0  ;;  %v1342_v4 = vpop.f32.mrb[15].mxu1  ;;  %v1200_v47 = vld [vmem:[%s1893_s3 + $0x98] sm:$0xff]  ;;  %v1213_v63 = vld [vmem:[%s1893_s3 + $0xe8] sm:$0xff] }
  0xfc   :  { %v1514_v48 = vpack.c.bf16 %v1200_v47, %v1199_v46  ;;  %v1529_v0 = vpack.c.bf16 %v1213_v63, %v1212_v62  ;;  %v1215_v4 = vld [vmem:[%s1893_s3 + $0xf8] sm:$0xff] }
  0xfd   :  { %v321_v5 = vmax.f32 %v312_v2, 0.0  ;;  %v1214_v2 = vld [vmem:[%s1893_s3 + $0xf0] sm:$0xff] }
  0xfe   :  { %v316_v7 = vpop.f32.mrb[16].mxu1 }
  0xff   :  { %v324_v8 = vmax.f32 %v225_v54, %v321_v5  ;;  %v317_v9 = vadd.f32 %v1158_v36, %v316_v7  ;;  %v1345_v10 = vpop.f32.mrb[17].mxu1  ;;  %v1520_v54 = vpack.c.bf16 %v1205_v53, %v1204_v52  ;;  %v1532_v5 = vpack.c.bf16 %v1215_v4, %v1214_v2  ;;  %v1217_v7 = vld [vmem:[%s1893_s3 + $0x100] sm:$0xff] }
 0x101   :  { %v322_v11 = vmax.f32 %v317_v9, 0.0 }
 0x102   :  { %v405_v12 = vpop.f32.mrb[18].mxu1 }
 0x103   :  { %v325_v13 = vmax.f32 %v226_v60, %v322_v11  ;;  %v406_v14 = vadd.f32 %v1158_v36, %v405_v12  ;;  %v1356_v15 = vpop.f32.mrb[19].mxu1  ;;  %v1210_v60 = vld [vmem:[%s1893_s3 + $0xd8] sm:$0xff]  ;;  %v1219_v11 = vld [vmem:[%s1893_s3 + $0x110] sm:$0xff] }
 0x104   :  { %v1526_v61 = vpack.c.bf16 %v1210_v60, %v1209_v59  ;;  %v1220_v12 = vld [vmem:[%s1893_s3 + $0x118] sm:$0xff] }
 0x105   :  { %v419_v16 = vmax.f32 %v406_v14, 0.0 }
 0x106   :  { %v410_v19 = vpop.f32.mrb[20].mxu1 }
 0x107   :  { %v422_v20 = vmax.f32 %v323_v1, %v419_v16  ;;  %v411_v21 = vadd.f32 %v1158_v36, %v410_v19  ;;  %v1359_v22 = vpop.f32.mrb[21].mxu1  ;;  %v1181_v16 = vld [vmem:[%s1894_s4] ss:$0 sm:$0xff] }
 0x109   :  { %v420_v24 = vmax.f32 %v411_v21, 0.0  ;;  %1372 = vmatmul.mubr.msk.f32.vlgmr.msra.gmra.mrb[24].mxu1 %vm35_vm1, %v422_v20  ;;  %v515_v25 = vrot.slane %v422_v20, 2  ;;  %v594_v38 = vrot.slane %v422_v20, 4  ;;  %v673_v45 = vrot.slane %v422_v20, 6 }
 0x10a   :  { %v415_v28 = vpop.f32.mrb[22].mxu1 }
 0x10b   :  { %v1759_v29 = vmax.f32 %v324_v8, %v420_v24  ;;  %v416_v30 = vadd.f32 %v1158_v36, %v415_v28  ;;  %1383 = vmatmul.mubr.msk.f32.vlgmr.msra.gmra.mrb[0].mxu0 %vm35_vm1, %v515_v25  ;;  %v1362_v31 = vpop.f32.mrb[23].mxu1  ;;  %v1218_v8 = vld [vmem:[%s1893_s3 + $0x108] sm:$0xff]  ;;  %s1587_s3 = smov [#allocation2]  }
 0x10c   :  { %1500 = vmatpush3.bf16.msra.mxu0 %v1499_v23  ;;  %1393 = vmatprep.mubr.msk.f32.mxu0 %vm1585_vm0, %v1586_v6  ;;  %v1535_v9 = vpack.c.bf16 %v1218_v8, %v1217_v7  ;;  %s1150_s16 = sshll.u32 %s1587_s3, 4  ;;  %s1151_s16 = int_to_ptr.vmem [resolvable:$true] %s1150_s16 }
 0x10d   :  { %v421_v33 = vmax.f32 %v416_v30, 0.0  ;;  %1501 = vmatprep.subr.bf16.mxu0 %v1584_v3  ;;  %v831_v58 = vrot.slane %v1759_v29, 2  ;;  %v910_v1 = vrot.slane %v1759_v29, 4  ;;  %v989_v10 = vrot.slane %v1759_v29, 6  ;;  %s1560_s17 = scalar_lea.vmem %s1151_s16, 32  ;;  %p1565_p1 = scmp.lt.s32.totalorder %s1151_s16, %s1151_s16 }
 0x10e   :  { %p1561_p0 = scmp.ne.s32.totalorder %s1151_s16, %s1560_s17  ;;  %p1566_p2 = scmp.lt.s32.totalorder %s1560_s17, %s1560_s17 }
 0x10f   :  { %v1771_v36 = vmax.f32 %v325_v13, %v421_v33  ;;  %v1538_v13 = vpack.c.bf16 %v1220_v12, %v1219_v11 }
 0x110   :  { %1503 = vmatpush3.bf16.msra.mxu0 %v1502_v32  ;;  %p1567_p3 = por %p1566_p2, %p1565_p1 }
 0x111   :  { %1504 = vmatprep.subr.bf16.mxu0 %v1584_v3 }
 0x112   :  { %p1568_p4 = pnand %p1567_p3, %p1561_p0 }
 0x113   :  { %1394 = vmatmul.mubr.msk.f32.vlgmr.msra.gmra.mrb[0].mxu0 %vm35_vm1, %v594_v38 }
 0x114   :  { %1506 = vmatpush3.bf16.msra.mxu0 %v1505_v37  ;;  %1404 = vmatprep.mubr.msk.f32.mxu0 %vm1585_vm0, %v1586_v6 }
 0x115   :  { %1507 = vmatprep.subr.bf16.mxu0 %v1584_v3 }
 0x118   :  { %1509 = vmatpush3.bf16.msra.mxu0 %v1508_v41 }
 0x119   :  { %1510 = vmatprep.subr.bf16.mxu0 %v1584_v3 }
 0x11b   :  { %1405 = vmatmul.mubr.msk.f32.vlgmr.msra.gmra.mrb[0].mxu0 %vm35_vm1, %v673_v45 }
 0x11c   :  { %1512 = vmatpush3.bf16.msra.mxu0 %v1511_v44  ;;  %1415 = vmatprep.mubr.msk.f32.mxu0 %vm1585_vm0, %v1586_v6 }
 0x11d   :  { %1513 = vmatprep.subr.bf16.mxu0 %v1584_v3 }
 0x120   :  { %1515 = vmatpush3.bf16.msra.mxu0 %v1514_v48 }
 0x121   :  { %1516 = vmatprep.subr.bf16.mxu0 %v1584_v3 }
 0x123   :  { %1416 = vmatmul.mubr.msk.f32.vlgmr.msra.gmra.mrb[0].mxu0 %vm35_vm1, %v1759_v29 }
 0x124   :  { %1518 = vmatpush3.bf16.msra.mxu0 %v1517_v51  ;;  %1426 = vmatprep.mubr.msk.f32.mxu0 %vm1585_vm0, %v1586_v6 }
 0x125   :  { %1519 = vmatprep.subr.bf16.mxu0 %v1584_v3 }
 0x128   :  { %1521 = vmatpush3.bf16.msra.mxu0 %v1520_v54 }
 0x129   :  { %1522 = vmatprep.subr.bf16.mxu0 %v1584_v3 }
 0x12b   :  { %1427 = vmatmul.mubr.msk.f32.vlgmr.msra.gmra.mrb[0].mxu0 %vm35_vm1, %v831_v58 }
 0x12c   :  { %1524 = vmatpush3.bf16.msra.mxu0 %v1523_v57  ;;  %1437 = vmatprep.mubr.msk.f32.mxu0 %vm1585_vm0, %v1586_v6 }
 0x12d   :  { %1525 = vmatprep.subr.bf16.mxu0 %v1584_v3 }
 0x130   :  { %1527 = vmatpush3.bf16.msra.mxu0 %v1526_v61 }
 0x131   :  { %1528 = vmatprep.subr.bf16.mxu0 %v1584_v3 }
 0x133   :  { %1438 = vmatmul.mubr.msk.f32.vlgmr.msra.gmra.mrb[0].mxu0 %vm35_vm1, %v910_v1 }
 0x134   :  { %1530 = vmatpush3.bf16.msra.mxu0 %v1529_v0  ;;  %1448 = vmatprep.mubr.msk.f32.mxu0 %vm1585_vm0, %v1586_v6 }
 0x135   :  { %1531 = vmatprep.subr.bf16.mxu0 %v1584_v3 }
 0x138   :  { %1533 = vmatpush3.bf16.msra.mxu0 %v1532_v5 }
 0x139   :  { %1534 = vmatprep.subr.bf16.mxu0 %v1584_v3 }
 0x13b   :  { %1449 = vmatmul.mubr.msk.f32.vlgmr.msra.gmra.mrb[0].mxu0 %vm35_vm1, %v989_v10 }
 0x13c   :  { %1536 = vmatpush3.bf16.msra.mxu0 %v1535_v9  ;;  %1459 = vmatprep.mubr.msk.f32.mxu0 %vm1585_vm0, %v1586_v6 }
 0x13d   :  { %1537 = vmatprep.subr.bf16.mxu0 %v1584_v3 }
 0x140   :  { %1539 = vmatpush3.bf16.msra.mxu0 %v1538_v13 }
 0x143   :  { %1460 = vmatmul.mubr.msk.f32.vlgmr.msra.gmra.mrb[0].mxu0 %vm35_vm1, %v1771_v36 }
 0x1dc   :  { %v499_v14 = vpop.f32.mrb[24].mxu1 }
 0x1dd   :  { %v1373_v15 = vpop.f32.mrb[25].mxu1  ;;  %v509_v17 = vadd.f32 %v1181_v16, %v499_v14 }
 0x216   :  { %v1137_v18 = vpop.f32.mrb[0].mxu0 }
 0x217   :  { %v1541_v19 = vadd.f32 %v1137_v18, %v509_v17  ;;  %v1461_v20 = vpop.f32.mrb[1].mxu0 }
 0x219   :  { %1143 = vst.msk [vmem:[#allocation2] sm:$0x3] %vm1142_vm2, %v1541_v19 }
 0x21a   :  { %1571 = shalt.err (!%p1568_p4)
}
 0x21b   :  { %s1572_s4 = scalar_lea.hbm %s1895_s5, 32 }
 0x21c   :  { %p1573_p5 = scmp.ne.s32.totalorder %s1895_s5, %s1572_s4  ;;  %p1576_p6 = scmp.lt.u32.totalorder %s1572_s4, %s1895_s5 }
 0x21e   :  { %p1578_p7 = pnand %p1576_p6, %p1573_p5 }
 0x220   :  { %1581 = shalt.err (!%p1578_p7)
}
 0x221   :  { %1153 = dma.vmem_to_hbm [thread:$0]  %s1151_s16, 32, %s1895_s5, [#allocation3]  }
 0x222   :  { %1582 = dma.done.wait [#allocation3], 32  }
 0x223   :  { %1583 = vsyncadd [#allocation3], 4294967264 }
 0x224   :  { %1157 = vsyncpa [#allocation3], 1 }

</bundles_post_ra>
